<compile_context>
chip_gen: v7x
topology: tpu7x:2x2x1
jax: 0.10.0
libtpu: 0.0.40
codegen_flags: <defaults>
</compile_context>

<pallas_src>
import jax
import jax.numpy as jnp
from jax.experimental import pallas as pl
from jax.experimental.pallas import tpu as pltpu

OUT_REAL = 2   # real fc4 outputs
OUT_PAD = 8    # fc4 outputs padded to the f32 sublane tile (cheap + legal block)


def mlp_kernel(x_ref, w1_ref, b1_ref, w2_ref, b2_ref,
               w3_ref, b3_ref, w4_ref, b4_ref, o_ref):
    x = x_ref[...]                                                # (TB, 1) f32

    # Layer 1: contraction depth is 1 -> pure VPU broadcast multiply (f32).
    h1 = jnp.maximum(x * w1_ref[...] + b1_ref[...], 0.0)         # (TB, 64)

    # Layers 2-4: MXU matmuls, bf16 operands, f32 accumulation.
    h2 = jnp.dot(h1.astype(jnp.bfloat16), w2_ref[...],
                 preferred_element_type=jnp.float32) + b2_ref[...]
    h2 = jnp.maximum(h2, 0.0)                                     # (TB, 128)
    h3 = jnp.dot(h2.astype(jnp.bfloat16), w3_ref[...],
                 preferred_element_type=jnp.float32) + b3_ref[...]
    h3 = jnp.maximum(h3, 0.0)                                     # (TB, 64)
    o_ref[...] = jnp.dot(h3.astype(jnp.bfloat16), w4_ref[...],
                         preferred_element_type=jnp.float32) + b4_ref[...]  # (TB, 8)


def _round_up(n, m):
    return ((n + m - 1) // m) * m


def prepare_params(params):
    """One-time prep: zero-pad fc4 to 8 output cols, pre-cast MXU weights to bf16."""
    w1, b1, w2, b2, w3, b3, w4, b4 = params
    w4p = jnp.zeros((w4.shape[0], OUT_PAD), jnp.float32).at[:, :w4.shape[1]].set(w4)
    b4p = jnp.zeros((1, OUT_PAD), jnp.float32).at[:, :b4.shape[1]].set(b4)
    return (w1.astype(jnp.float32), b1.astype(jnp.float32),
            w2.astype(jnp.bfloat16), b2.astype(jnp.float32),
            w3.astype(jnp.bfloat16), b3.astype(jnp.float32),
            w4p.astype(jnp.bfloat16), b4p.astype(jnp.float32))


def net_forward(x, kparams, block_b=4096):
    """x: (B,) or (B, 1) float32 -> (B, 2) float32 (kparams from prepare_params)."""
    x = x.reshape(-1, 1).astype(jnp.float32)                      # torch .view(-1, 1)
    B = x.shape[0]
    w1, b1, w2, b2, w3, b3, w4p, b4p = kparams

    # Batch tiling: enough blocks to keep TB <= block_b, at least 2 blocks once
    # B >= 16 (keeps both v7x TensorCores busy), TB a multiple of 8 and sized
    # from ceil(B / n_blocks) so padding waste is < 8 rows per block.
    n_blocks = pl.cdiv(B, block_b)
    if B >= 16:
        n_blocks = max(n_blocks, 2)
    TB = _round_up(pl.cdiv(B, n_blocks), 8)
    Bp = TB * n_blocks
    if Bp != B:
        x = jnp.pad(x, ((0, Bp - B), (0, 0)))

    def resident(a):
        # Weights/biases: constant block index -> loaded once, VMEM-resident.
        return pl.BlockSpec(a.shape, lambda i: (0,) * a.ndim)

    out = pl.pallas_call(
        mlp_kernel,
        out_shape=jax.ShapeDtypeStruct((Bp, OUT_PAD), jnp.float32),
        grid=(n_blocks,),
        in_specs=[
            pl.BlockSpec((TB, 1), lambda i: (i, 0)),              # x: streamed
            resident(w1), resident(b1),
            resident(w2), resident(b2),
            resident(w3), resident(b3),
            resident(w4p), resident(b4p),
        ],
        out_specs=pl.BlockSpec((TB, OUT_PAD), lambda i: (i, 0)),
        compiler_params=pltpu.CompilerParams(
            dimension_semantics=("parallel",),                    # megacore shard on v7x
            vmem_limit_bytes=48 * 1024 * 1024),
    )(x, w1, b1, w2, b2, w3, b3, w4p, b4p)

    # Padded batch rows / padded output columns are garbage by construction;
    # slice them off here (keep this slice if the layout ever changes).
    return out[:B, :OUT_REAL]


def init_params(key):
    """Deterministic init matching nn.Linear shapes (stored as (in, out))."""
    dims = [(1, 64), (64, 128), (128, 64), (64, 2)]
    params = []
    for fan_in, fan_out in dims:
        kw, kb, key = jax.random.split(key, 3)
        bound = 1.0 / (fan_in ** 0.5)
        w = jax.random.uniform(kw, (fan_in, fan_out), jnp.float32, -bound, bound)
        b = jax.random.uniform(kb, (1, fan_out), jnp.float32, -bound, bound)
        params.extend([w, b])
    return tuple(params)


def reference_forward(x, params):
    """Pure-f32 reference == PyTorch module semantics."""
    x = x.reshape(-1, 1).astype(jnp.float32)
    w1, b1, w2, b2, w3, b3, w4, b4 = params
    h = jnp.maximum(x @ w1 + b1, 0.0)
    h = jnp.maximum(h @ w2 + b2, 0.0)
    h = jnp.maximum(h @ w3 + b3, 0.0)
    return h @ w4 + b4


def reference_forward_mixed(x, kparams):
    """Reference with the kernel's precision recipe (bf16 MXU operands, f32 acc)."""
    x = x.reshape(-1, 1).astype(jnp.float32)
    w1, b1, w2, b2, w3, b3, w4p, b4p = kparams
    h = jnp.maximum(x * w1 + b1, 0.0)
    h = jnp.maximum(jnp.dot(h.astype(jnp.bfloat16), w2,
                            preferred_element_type=jnp.float32) + b2, 0.0)
    h = jnp.maximum(jnp.dot(h.astype(jnp.bfloat16), w3,
                            preferred_element_type=jnp.float32) + b3, 0.0)
    out = jnp.dot(h.astype(jnp.bfloat16), w4p,
                  preferred_element_type=jnp.float32) + b4p
    return out[:, :OUT_REAL]


if __name__ == "__main__":
    key = jax.random.PRNGKey(0)
    kx, kp = jax.random.split(key)
    params = init_params(kp)
    kparams = prepare_params(params)          # hoisted: pad + bf16 casts done once

    fwd = jax.jit(net_forward)

    # Small batch (matches the original test), a non-multiple-of-8 batch, and a
    # multi-block batch to exercise padding / tiling / megacore paths.
    for B in (8, 37, 1000):
        x = jax.random.uniform(jax.random.fold_in(kx, B), (B,), jnp.float32)
        out = jax.block_until_ready(fwd(x, kparams))
        assert out.shape == (B, 2), out.shape
        # Tight check vs. a precision-matched reference (kernel plumbing).
        ref_mixed = reference_forward_mixed(x, kparams)
        assert jnp.allclose(out, ref_mixed, atol=1e-3, rtol=1e-3), f"mixed mismatch B={B}"
        # Looser check vs. the pure-f32 (PyTorch-equivalent) reference.
        ref_f32 = reference_forward(x, params)
        assert jnp.allclose(out, ref_f32, atol=5e-2, rtol=5e-2), f"f32 mismatch B={B}"

    print("KERNEL_OK")
</pallas_src>

<mosaic_0001>
module attributes {stable_mosaic.version = 11 : i64} {
  func.func @mlp_kernel(%arg0: i32, %arg1: memref<8x1xf32, #tpu.memory_space<vmem>>, %arg2: memref<1x64xf32, #tpu.memory_space<vmem>>, %arg3: memref<1x64xf32, #tpu.memory_space<vmem>>, %arg4: memref<64x128xbf16, #tpu.memory_space<vmem>>, %arg5: memref<1x128xf32, #tpu.memory_space<vmem>>, %arg6: memref<128x64xbf16, #tpu.memory_space<vmem>>, %arg7: memref<1x64xf32, #tpu.memory_space<vmem>>, %arg8: memref<64x8xbf16, #tpu.memory_space<vmem>>, %arg9: memref<1x8xf32, #tpu.memory_space<vmem>>, %arg10: memref<8x8xf32, #tpu.memory_space<vmem>>) attributes {dimension_semantics = [#tpu.dimension_semantics<parallel>], iteration_bounds = array<i64: 1>, scalar_prefetch = 0 : i64, scratch_operands = 0 : i64, tpu.core_type = #tpu.core_type<tc>, window_params = [{transform_indices = @transform_0, window_bounds = array<i64: 8, 1>}, {pipeline_mode = #tpu.pipeline_mode<synchronous>, transform_indices = @transform_1, window_bounds = array<i64: 1, 64>}, {pipeline_mode = #tpu.pipeline_mode<synchronous>, transform_indices = @transform_2, window_bounds = array<i64: 1, 64>}, {pipeline_mode = #tpu.pipeline_mode<synchronous>, transform_indices = @transform_3, window_bounds = array<i64: 64, 128>}, {pipeline_mode = #tpu.pipeline_mode<synchronous>, transform_indices = @transform_4, window_bounds = array<i64: 1, 128>}, {pipeline_mode = #tpu.pipeline_mode<synchronous>, transform_indices = @transform_5, window_bounds = array<i64: 128, 64>}, {pipeline_mode = #tpu.pipeline_mode<synchronous>, transform_indices = @transform_6, window_bounds = array<i64: 1, 64>}, {pipeline_mode = #tpu.pipeline_mode<synchronous>, transform_indices = @transform_7, window_bounds = array<i64: 64, 8>}, {pipeline_mode = #tpu.pipeline_mode<synchronous>, transform_indices = @transform_8, window_bounds = array<i64: 1, 8>}, {transform_indices = @transform_9, window_bounds = array<i64: 8, 8>}]} {
    %c0 = arith.constant 0 : index
    %c0_0 = arith.constant 0 : index
    %0 = vector.load %arg1[%c0, %c0_0] : memref<8x1xf32, #tpu.memory_space<vmem>>, vector<8x1xf32>
    %c0_1 = arith.constant 0 : index
    %c0_2 = arith.constant 0 : index
    %1 = vector.load %arg2[%c0_1, %c0_2] : memref<1x64xf32, #tpu.memory_space<vmem>>, vector<1x64xf32>
    %2 = vector.broadcast %0 : vector<8x1xf32> to vector<8x64xf32>
    %3 = vector.broadcast %1 : vector<1x64xf32> to vector<8x64xf32>
    %4 = arith.mulf %2, %3 : vector<8x64xf32>
    %c0_3 = arith.constant 0 : index
    %c0_4 = arith.constant 0 : index
    %5 = vector.load %arg3[%c0_3, %c0_4] : memref<1x64xf32, #tpu.memory_space<vmem>>, vector<1x64xf32>
    %6 = vector.broadcast %5 : vector<1x64xf32> to vector<8x64xf32>
    %7 = arith.addf %4, %6 : vector<8x64xf32>
    %cst = arith.constant 0.000000e+00 : f32
    %8 = vector.broadcast %cst : f32 to vector<8x64xf32>
    %9 = arith.maximumf %7, %8 : vector<8x64xf32>
    %10 = arith.truncf %9 : vector<8x64xf32> to vector<8x64xbf16>
    %c0_5 = arith.constant 0 : index
    %c0_6 = arith.constant 0 : index
    %11 = vector.load %arg4[%c0_5, %c0_6] : memref<64x128xbf16, #tpu.memory_space<vmem>>, vector<64x128xbf16>
    %cst_7 = arith.constant dense<0.000000e+00> : vector<8x128xf32>
    %12 = tpu.matmul %10, %11, %cst_7 {dimension_numbers = #tpu.dot_dimension_numbers<[1], [0], [0], [1], [0, 0, 1, 1], [], []>} : vector<8x64xbf16>, vector<64x128xbf16>, vector<8x128xf32> -> vector<8x128xf32>
    %c0_8 = arith.constant 0 : index
    %c0_9 = arith.constant 0 : index
    %13 = vector.load %arg5[%c0_8, %c0_9] : memref<1x128xf32, #tpu.memory_space<vmem>>, vector<1x128xf32>
    %14 = vector.broadcast %13 : vector<1x128xf32> to vector<8x128xf32>
    %15 = arith.addf %12, %14 : vector<8x128xf32>
    %cst_10 = arith.constant 0.000000e+00 : f32
    %16 = vector.broadcast %cst_10 : f32 to vector<8x128xf32>
    %17 = arith.maximumf %15, %16 : vector<8x128xf32>
    %18 = arith.truncf %17 : vector<8x128xf32> to vector<8x128xbf16>
    %c0_11 = arith.constant 0 : index
    %c0_12 = arith.constant 0 : index
    %19 = vector.load %arg6[%c0_11, %c0_12] : memref<128x64xbf16, #tpu.memory_space<vmem>>, vector<128x64xbf16>
    %cst_13 = arith.constant dense<0.000000e+00> : vector<8x64xf32>
    %20 = tpu.matmul %18, %19, %cst_13 {dimension_numbers = #tpu.dot_dimension_numbers<[1], [0], [0], [1], [0, 0, 1, 1], [], []>} : vector<8x128xbf16>, vector<128x64xbf16>, vector<8x64xf32> -> vector<8x64xf32>
    %c0_14 = arith.constant 0 : index
    %c0_15 = arith.constant 0 : index
    %21 = vector.load %arg7[%c0_14, %c0_15] : memref<1x64xf32, #tpu.memory_space<vmem>>, vector<1x64xf32>
    %22 = vector.broadcast %21 : vector<1x64xf32> to vector<8x64xf32>
    %23 = arith.addf %20, %22 : vector<8x64xf32>
    %cst_16 = arith.constant 0.000000e+00 : f32
    %24 = vector.broadcast %cst_16 : f32 to vector<8x64xf32>
    %25 = arith.maximumf %23, %24 : vector<8x64xf32>
    %26 = arith.truncf %25 : vector<8x64xf32> to vector<8x64xbf16>
    %c0_17 = arith.constant 0 : index
    %c0_18 = arith.constant 0 : index
    %27 = vector.load %arg8[%c0_17, %c0_18] : memref<64x8xbf16, #tpu.memory_space<vmem>>, vector<64x8xbf16>
    %cst_19 = arith.constant dense<0.000000e+00> : vector<8x8xf32>
    %28 = tpu.matmul %26, %27, %cst_19 {dimension_numbers = #tpu.dot_dimension_numbers<[1], [0], [0], [1], [0, 0, 1, 1], [], []>} : vector<8x64xbf16>, vector<64x8xbf16>, vector<8x8xf32> -> vector<8x8xf32>
    %c0_20 = arith.constant 0 : index
    %c0_21 = arith.constant 0 : index
    %29 = vector.load %arg9[%c0_20, %c0_21] : memref<1x8xf32, #tpu.memory_space<vmem>>, vector<1x8xf32>
    %30 = vector.broadcast %29 : vector<1x8xf32> to vector<8x8xf32>
    %31 = arith.addf %28, %30 : vector<8x8xf32>
    %c0_22 = arith.constant 0 : index
    %c0_23 = arith.constant 0 : index
    %32 = vector.load %arg10[%c0_22, %c0_23] : memref<8x8xf32, #tpu.memory_space<vmem>>, vector<8x8xf32>
    tpu.vector_store %arg10[%c0_22, %c0_23], %31 {strides = array<i32>} : memref<8x8xf32, #tpu.memory_space<vmem>>, vector<8x8xf32>,
    return
  }
  func.func @transform_0(%arg0: i32) -> (i32, i32) {
    %c0_i32 = arith.constant 0 : i32
    %c0_i32_0 = arith.constant 0 : i32
    return %arg0, %c0_i32 : i32, i32
  }
  func.func @transform_1(%arg0: i32) -> (i32, i32) {
    %c0_i32 = arith.constant 0 : i32
    %c0_i32_0 = arith.constant 0 : i32
    %c0_i32_1 = arith.constant 0 : i32
    return %c0_i32, %c0_i32_0 : i32, i32
  }
  func.func @transform_2(%arg0: i32) -> (i32, i32) {
    %c0_i32 = arith.constant 0 : i32
    %c0_i32_0 = arith.constant 0 : i32
    %c0_i32_1 = arith.constant 0 : i32
    return %c0_i32, %c0_i32_0 : i32, i32
  }
  func.func @transform_3(%arg0: i32) -> (i32, i32) {
    %c0_i32 = arith.constant 0 : i32
    %c0_i32_0 = arith.constant 0 : i32
    %c0_i32_1 = arith.constant 0 : i32
    return %c0_i32, %c0_i32_0 : i32, i32
  }
  func.func @transform_4(%arg0: i32) -> (i32, i32) {
    %c0_i32 = arith.constant 0 : i32
    %c0_i32_0 = arith.constant 0 : i32
    %c0_i32_1 = arith.constant 0 : i32
    return %c0_i32, %c0_i32_0 : i32, i32
  }
  func.func @transform_5(%arg0: i32) -> (i32, i32) {
    %c0_i32 = arith.constant 0 : i32
    %c0_i32_0 = arith.constant 0 : i32
    %c0_i32_1 = arith.constant 0 : i32
    return %c0_i32, %c0_i32_0 : i32, i32
  }
  func.func @transform_6(%arg0: i32) -> (i32, i32) {
    %c0_i32 = arith.constant 0 : i32
    %c0_i32_0 = arith.constant 0 : i32
    %c0_i32_1 = arith.constant 0 : i32
    return %c0_i32, %c0_i32_0 : i32, i32
  }
  func.func @transform_7(%arg0: i32) -> (i32, i32) {
    %c0_i32 = arith.constant 0 : i32
    %c0_i32_0 = arith.constant 0 : i32
    %c0_i32_1 = arith.constant 0 : i32
    return %c0_i32, %c0_i32_0 : i32, i32
  }
  func.func @transform_8(%arg0: i32) -> (i32, i32) {
    %c0_i32 = arith.constant 0 : i32
    %c0_i32_0 = arith.constant 0 : i32
    %c0_i32_1 = arith.constant 0 : i32
    return %c0_i32, %c0_i32_0 : i32, i32
  }
  func.func @transform_9(%arg0: i32) -> (i32, i32) {
    %c0_i32 = arith.constant 0 : i32
    %c0_i32_0 = arith.constant 0 : i32
    return %arg0, %c0_i32 : i32, i32
  }
}

</mosaic_0001>

<bundles_post_ra>
// kernel: net_forward.1
= control target key start
LH: loop header
LB: loop body
LE: loop exit
PB: predicated region body
PF: predicated region fallthrough
CT: control target
= control target key end

     0   :  { %v449_v0 = vmov 0   ;;  %v450_v2 = vmov 0.0   ;;  %vm451_vm0 = vmmov 0   ;;  %vm96_vm1 = vcmask 523264   ;;  %s595_s0 = inlined_call_operand.vmem [shape: f32[8,1], index: 0, kind: input, shape index: {}]   ;;  %s596_s3 = inlined_call_operand.vmem [shape: bf16[64,128], index: 3, kind: input, shape index: {}]   ;;  %s597_s5 = inlined_call_operand.vmem [shape: bf16[128,64], index: 5, kind: input, shape index: {}]   ;;  %s598_s1 = inlined_call_operand.vmem [shape: f32[1,64], index: 1, kind: input, shape index: {}]   ;;  %s599_s2 = inlined_call_operand.vmem [shape: f32[1,64], index: 2, kind: input, shape index: {}]   ;;  %s600_s7 = inlined_call_operand.vmem [shape: bf16[64,8], index: 7, kind: input, shape index: {}]   ;;  %s601_s4 = inlined_call_operand.vmem [shape: f32[1,128], index: 4, kind: input, shape index: {}]   ;;  %s602_s6 = inlined_call_operand.vmem [shape: f32[1,64], index: 6, kind: input, shape index: {}]   ;;  %s603_s8 = inlined_call_operand.vmem [shape: f32[1,8], index: 8, kind: input, shape index: {}]   ;;  %s604_s9 = inlined_call_operand.vmem [shape: f32[8,8], index: 9, kind: output, shape index: {}]  }
   0x1   :  { %432 = vset.pattern.permute.xlu0 %v449_v0  ;;  %v33_v1 = vld [vmem:[%s595_s0] sm:$0xff]  ;;  %385 = vmatprep.subr.bf16.mxu0 %v450_v2  ;;  %v434_v4 = vld [vmem:[%s596_s3 + $0x8] sm:$0xff]   ;;  %v435_v5 = vld [vmem:[%s596_s3 + $0x10] sm:$0xff]   ;;  %vm337_vm2 = vcmask 64512  }
   0x2   :  { %37 = vperm.xlu0 %432, %v33_v1   ;;  %v433_v3 = vld [vmem:[%s596_s3] sm:$0xff]   ;;  %397 = vmatprep.subr.bf16.mxu1 %v450_v2  ;;  %v436_v7 = vld [vmem:[%s596_s3 + $0x18] sm:$0xff]   ;;  %v438_v8 = vld [vmem:[%s597_s5 + $0x8] sm:$0xff]  }
   0x3   :  { %386 = vmatpush3.bf16.msra.mxu0 %v433_v3  ;;  %393 = vmatprep.mubr.msk.bf16.mxu0 %vm451_vm0, %v450_v2  ;;  %v437_v6 = vld [vmem:[%s597_s5] sm:$0xff]   ;;  %v439_v9 = vld [vmem:[%s597_s5 + $0x10] sm:$0xff]   ;;  %v440_v10 = vld [vmem:[%s597_s5 + $0x18] sm:$0xff]  }
   0x4   :  { %387 = vmatprep.subr.bf16.mxu0 %v450_v2  ;;  %413 = vmatprep.mubr.msk.bf16.mxu1 %vm451_vm0, %v450_v2  ;;  %v441_v11 = vld [vmem:[%s597_s5 + $0x20] sm:$0xff]   ;;  %v442_v12 = vld [vmem:[%s597_s5 + $0x28] sm:$0xff]   ;;  %v443_v20 = vld [vmem:[%s597_s5 + $0x30] sm:$0xff]  }
   0x5   :  { %398 = vmatpush3.bf16.msra.mxu1 %v437_v6  ;;  %v343_v13 = vld [vmem:[%s598_s1] ss:$0 sm:$0xff]  ;;  %v444_v21 = vld [vmem:[%s597_s5 + $0x38] sm:$0xff]   ;;  %v446_v23 = vld [vmem:[%s600_s7 + $0x8] sm:$0xff]  }
   0x6   :  { %399 = vmatprep.subr.bf16.mxu1 %v450_v2  ;;  %v344_v14 = vld [vmem:[%s599_s2] ss:$0 sm:$0xff]  ;;  %v447_v32 = vld [vmem:[%s600_s7 + $0x10] sm:$0xff]   ;;  %v448_v33 = vld [vmem:[%s600_s7 + $0x18] sm:$0xff]  }
   0x7   :  { %388 = vmatpush3.bf16.msra.mxu0 %v434_v4  ;;  %v445_v22 = vld [vmem:[%s600_s7] sm:$0xff]  }
   0x8   :  { %389 = vmatprep.subr.bf16.mxu0 %v450_v2  ;;  %v345_v24 = vld [vmem:[%s601_s4] ss:$0 sm:$0xff] }
   0x9   :  { %400 = vmatpush3.bf16.msra.mxu1 %v438_v8  ;;  %v351_v34 = vld [vmem:[%s602_s6] ss:$0 sm:$0xff] }
   0xa   :  { %401 = vmatprep.subr.bf16.mxu1 %v450_v2  ;;  %v360_v42 = vld [vmem:[%s603_s8] ss:$0 sm:$0xff] }
   0xb   :  { %390 = vmatpush3.bf16.msra.mxu0 %v435_v5 }
   0xc   :  { %391 = vmatprep.subr.bf16.mxu0 %v450_v2 }
   0xd   :  { %402 = vmatpush3.bf16.msra.mxu1 %v439_v9 }
   0xe   :  { %403 = vmatprep.subr.bf16.mxu1 %v450_v2 }
   0xf   :  { %392 = vmatpush3.bf16.msra.mxu0 %v436_v7 }
  0x10   :  { %417 = vmatprep.subr.bf16.mxu0 %v450_v2 }
  0x11   :  { %404 = vmatpush3.bf16.msra.mxu1 %v440_v10 }
  0x12   :  { %405 = vmatprep.subr.bf16.mxu1 %v450_v2 }
  0x15   :  { %406 = vmatpush3.bf16.msra.mxu1 %v441_v11 }
  0x16   :  { %407 = vmatprep.subr.bf16.mxu1 %v450_v2 }
  0x19   :  { %408 = vmatpush3.bf16.msra.mxu1 %v442_v12 }
  0x1a   :  { %409 = vmatprep.subr.bf16.mxu1 %v450_v2 }
  0x1d   :  { %410 = vmatpush3.bf16.msra.mxu1 %v443_v20 }
  0x1e   :  { %411 = vmatprep.subr.bf16.mxu1 %v450_v2 }
  0x21   :  { %412 = vmatpush3.bf16.msra.mxu1 %v444_v21 }
  0x81   :  { %v38_v15 = vpop.permute.xlu0 %37 }
  0x82   :  { %v46_v16 = vmul.f32 %v343_v13, %v38_v15 }
  0x84   :  { %v54_v17 = vadd.f32 %v344_v14, %v46_v16 }
  0x86   :  { %v55_v18 = vmax.f32 %v54_v17, 0.0 }
  0x88   :  { %v56_v19 = vpack.c.bf16 %v55_v18, %v55_v18 }
  0x8a   :  { %394 = vmatmul.mubr.msk.bf16.vlgmr.msra.gmra.mrb[0].mxu0 %vm96_vm1, %v56_v19 }
  0x8b   :  { %425 = vmatprep.mubr.msk.bf16.mxu0 %vm451_vm0, %v450_v2  ;;  %418 = vmatpush3.bf16.msra.mxu0 %v445_v22 }
  0x8c   :  { %419 = vmatprep.subr.bf16.mxu0 %v450_v2 }
  0x8f   :  { %420 = vmatpush3.bf16.msra.mxu0 %v446_v23 }
  0x90   :  { %421 = vmatprep.subr.bf16.mxu0 %v450_v2 }
  0x93   :  { %422 = vmatpush3.bf16.msra.mxu0 %v447_v32 }
  0x94   :  { %423 = vmatprep.subr.bf16.mxu0 %v450_v2 }
  0x97   :  { %424 = vmatpush3.bf16.msra.mxu0 %v448_v33 }
 0x15d   :  { %v134_v25 = vpop.f32.mrb[0].mxu0 }
 0x15e   :  { %v135_v26 = vadd.f32 %v345_v24, %v134_v25  ;;  %v395_v27 = vpop.f32.mrb[1].mxu0 }
 0x15f   :  { %v137_v28 = vpop.f32.mrb[2].mxu0 }
 0x160   :  { %v140_v29 = vmax.f32 %v135_v26, 0.0  ;;  %v396_v30 = vpop.f32.mrb[3].mxu0 }
 0x162   :  { %v141_v31 = vpack.c.bf16 %v140_v29, %v140_v29 }
 0x164   :  { %414 = vmatmul.mubr.bf16.vlgmr.msra.gmra.mrb[0].mxu1 %v141_v31 }
 0x237   :  { %v247_v35 = vpop.f32.mrb[0].mxu1 }
 0x238   :  { %v248_v36 = vadd.f32 %v351_v34, %v247_v35  ;;  %v415_v37 = vpop.f32.mrb[1].mxu1 }
 0x239   :  { %v250_v38 = vpop.f32.mrb[2].mxu1 }
 0x23a   :  { %v253_v39 = vmax.f32 %v248_v36, 0.0  ;;  %v416_v40 = vpop.f32.mrb[3].mxu1 }
 0x23c   :  { %v254_v41 = vpack.c.bf16 %v253_v39, %v253_v39 }
 0x23e   :  { %426 = vmatmul.mubr.msk.bf16.vlgmr.msra.gmra.mrb[4].mxu0 %vm96_vm1, %v254_v41 }
 0x311   :  { %v331_v43 = vpop.f32.mrb[4].mxu0 }
 0x312   :  { %v332_v44 = vadd.f32 %v360_v42, %v331_v43  ;;  %v427_v45 = vpop.f32.mrb[5].mxu0 }
 0x313   :  { %v334_v46 = vpop.f32.mrb[6].mxu0 }
 0x314   :  { %338 = vst.msk [vmem:[%s604_s9] sm:$0xff] %vm337_vm2, %v332_v44  ;;  %v428_v47 = vpop.f32.mrb[7].mxu0 }

</bundles_post_ra>
